<compile_context>
chip_gen: v6e
topology: v6e:2x2x1
jax: 0.10.0
libtpu: 0.0.40
codegen_flags: <defaults>
</compile_context>

<pallas_src>
import jax
import jax.numpy as jnp
from jax.experimental import pallas as pl
from jax.experimental.pallas import tpu as pltpu


def multihead_kernel(x_ref, wq_ref, wk_ref, wv_ref, wo_ref, bo_ref,
                     jmask_ref, dmat_ref, o_ref):
    TB, E = x_ref.shape
    hs = jmask_ref.shape[0]             # head size
    cdt = wq_ref.dtype                  # matmul operand dtype (f32 or bf16)

    x = x_ref[...].astype(cdt)          # (TB, E)

    # Fused, lane-dense projections; the E^-0.5 scale is already folded into Wq.
    q = jnp.dot(x, wq_ref[...], preferred_element_type=jnp.float32)   # (TB, E) f32
    k = jnp.dot(x, wk_ref[...], preferred_element_type=jnp.float32)   # (TB, E) f32
    v = jnp.dot(x, wv_ref[...], preferred_element_type=jnp.float32)   # (TB, E) f32

    # Rearrange k, v to the "rows = (b, j), lanes = (head, i)" layout without transposes:
    #   kl[b, j, h*hs+i] = k[b, h*hs+j]
    # jmask[j, h*hs+j'] = (j' == j);  dmat[h*hs+j', h2*hs+i] = (h == h2)  (block-diag ones).
    jmask = jmask_ref[...]              # (hs, E) f32
    dmat = dmat_ref[...]                # (E, E)  cdt

    mk = (k[:, None, :] * jmask).astype(cdt).reshape(TB * hs, E)
    kl = jnp.dot(mk, dmat, preferred_element_type=jnp.float32).reshape(TB, hs, E)
    mv = (v[:, None, :] * jmask).astype(cdt).reshape(TB * hs, E)
    vl = jnp.dot(mv, dmat, preferred_element_type=jnp.float32).reshape(TB, hs, E)

    # logits[b, j, h*hs+i] = (E^-0.5) * q_raw[b, h*hs+i] * k[b, h*hs+j]
    logits = q[:, None, :] * kl                                        # (TB, hs, E) f32

    # Numerically-stable softmax over j (the 8-wide sublane axis) -- fully lane-dense.
    m = jnp.max(logits, axis=1, keepdims=True)                         # (TB, 1, E)
    e = jnp.exp(logits - m)
    den = jnp.sum(e, axis=1, keepdims=True)                            # (TB, 1, E)
    p = e * pl.reciprocal(den, approx=True)                            # softmax weights
    # (attention dropout: identity in eval mode)

    # heads[b, h*hs+i] = sum_j p[b,j,h*hs+i] * v[b,h*hs+j]  -> already concatenated (TB, E)
    heads = jnp.sum(p * vl, axis=1)                                    # (TB, E) f32

    # Output projection (lane-padded to a multiple of 128) + bias.
    y = jnp.dot(heads.astype(cdt), wo_ref[...],
                preferred_element_type=jnp.float32) + bo_ref[...]
    # (output dropout: identity in eval mode)
    o_ref[...] = y.astype(o_ref.dtype)


def multihead_forward(x, wq, wk, wv, wo, bo, *, compute_dtype=jnp.float32):
    """x: (B, E); wq/wk/wv: (H, E, hs) pre-transposed to (in, out); wo: (E, E); bo: (E,) or (1, E)."""
    B, E = x.shape
    H, _, hs = wq.shape
    assert H * hs == E

    scale = float(E) ** -0.5            # PyTorch uses N ** (-0.5) with N = n_embd

    # (H, E, hs) -> (E, E) with output column c = h*hs + t  (heads concatenated along lanes).
    def fold(w):
        return jnp.transpose(w, (1, 0, 2)).reshape(E, H * hs)

    wq_f = (fold(wq) * scale).astype(compute_dtype)   # scale folded into Wq
    wk_f = fold(wk).astype(compute_dtype)
    wv_f = fold(wv).astype(compute_dtype)

    # Lane-dense output projection: pad N up to a multiple of 128 (stripped after the call).
    E_pad = ((E + 127) // 128) * 128
    wo_p = jnp.pad(wo, ((0, 0), (0, E_pad - E))).astype(compute_dtype)
    bo_p = jnp.pad(jnp.asarray(bo, jnp.float32).reshape(1, E), ((0, 0), (0, E_pad - E)))

    # Tiny constant layout helpers.
    col = jnp.arange(E)
    jmask = (jnp.arange(hs)[:, None] == (col % hs)[None, :]).astype(jnp.float32)   # (hs, E)
    dmat = ((col // hs)[:, None] == (col // hs)[None, :]).astype(compute_dtype)    # (E, E)

    # Batch tile: largest candidate that divides B (whole B if none divides).
    TB = B
    for cand in (128, 64, 32, 16, 8):
        if B % cand == 0:
            TB = cand
            break
    nb = B // TB
    # NOTE: at production sizes (hs = 392) the (TB, hs, E) f32 intermediates are ~TB*2.5 MB;
    # shrink TB (or tile the softmax over i) to stay inside VMEM, especially on v7x (64 MiB).

    out_p = pl.pallas_call(
        multihead_kernel,
        out_shape=jax.ShapeDtypeStruct((B, E_pad), x.dtype),
        grid=(nb,),
        in_specs=[
            pl.BlockSpec((TB, E), lambda i: (i, 0)),        # x: batch-tiled
            pl.BlockSpec((E, E), lambda i: (0, 0)),         # Wq (pre-scaled)
            pl.BlockSpec((E, E), lambda i: (0, 0)),         # Wk
            pl.BlockSpec((E, E), lambda i: (0, 0)),         # Wv
            pl.BlockSpec((E, E_pad), lambda i: (0, 0)),     # Wo (lane-padded)
            pl.BlockSpec((1, E_pad), lambda i: (0, 0)),     # bo
            pl.BlockSpec((hs, E), lambda i: (0, 0)),        # jmask
            pl.BlockSpec((E, E), lambda i: (0, 0)),         # dmat (block-diag ones)
        ],
        out_specs=pl.BlockSpec((TB, E_pad), lambda i: (i, 0)),
        compiler_params=pltpu.CompilerParams(
            dimension_semantics=("parallel",)),
    )(x, wq_f, wk_f, wv_f, wo_p, bo_p, jmask, dmat)

    return out_p[:, :E]


def ref_forward(x, wq, wk, wv, wo, bo):
    """Pure-JAX reference mirroring the PyTorch forward (eval mode)."""
    B, E = x.shape
    outs = []
    for h in range(wq.shape[0]):
        q = x @ wq[h]
        k = x @ wk[h]
        v = x @ wv[h]
        logits = jnp.einsum('bi,bj->bij', q, k) * (float(E) ** -0.5)
        p = jax.nn.softmax(logits, axis=-1)
        outs.append(jnp.einsum('bij,bj->bi', p, v))
    cat = jnp.concatenate(outs, axis=-1)
    return cat @ wo + jnp.asarray(bo).reshape(1, E)


if __name__ == "__main__":
    # Small shapes consistent with the module: num_heads * head_size == n_embd.
    B = 8
    n_embd = 32          # module uses 2*784; scaled down for the demo
    num_heads = 4
    head_size = n_embd // num_heads  # 8

    key = jax.random.PRNGKey(0)
    kx, kq, kk, kv, kwo, kbo, kx2 = jax.random.split(key, 7)

    x = jax.random.normal(kx, (B, n_embd), dtype=jnp.float32)

    # Weights stored as (in, out), i.e. W.T of the PyTorch nn.Linear layout.
    wq = jax.random.normal(kq, (num_heads, n_embd, head_size), dtype=jnp.float32) * 0.05
    wk = jax.random.normal(kk, (num_heads, n_embd, head_size), dtype=jnp.float32) * 0.05
    wv = jax.random.normal(kv, (num_heads, n_embd, head_size), dtype=jnp.float32) * 0.05
    wo = jax.random.normal(kwo, (n_embd, n_embd), dtype=jnp.float32) * 0.05
    bo = jax.random.normal(kbo, (1, n_embd), dtype=jnp.float32) * 0.05

    expected = ref_forward(x, wq, wk, wv, wo, bo)

    # f32 operands (tight-ish check; only deviation is the approximate softmax reciprocal).
    out = jax.block_until_ready(multihead_forward(x, wq, wk, wv, wo, bo))
    assert out.shape == (B, n_embd)
    assert jnp.allclose(out, expected, atol=5e-3, rtol=2e-2), "f32 mismatch vs JAX reference"

    # bf16 matmul operands (recommended MXU path on v6e/v7x); softmax math stays f32.
    out_bf16 = jax.block_until_ready(
        multihead_forward(x, wq, wk, wv, wo, bo, compute_dtype=jnp.bfloat16))
    assert jnp.allclose(out_bf16, expected, atol=3e-2, rtol=1e-1), "bf16 mismatch vs JAX reference"

    # Larger batch exercising a multi-step, megacore-parallel grid (B=256 -> TB=128, grid=(2,)).
    x2 = jax.random.normal(kx2, (256, n_embd), dtype=jnp.float32)
    out2 = jax.block_until_ready(multihead_forward(x2, wq, wk, wv, wo, bo))
    expected2 = ref_forward(x2, wq, wk, wv, wo, bo)
    assert jnp.allclose(out2, expected2, atol=5e-3, rtol=2e-2), "batched-grid mismatch vs JAX reference"

    print("KERNEL_OK")
</pallas_src>

<mosaic_0001>
module attributes {stable_mosaic.version = 11 : i64} {
  func.func @multihead_kernel(%arg0: i32, %arg1: memref<8x32xf32, #tpu.memory_space<vmem>>, %arg2: memref<32x32xf32, #tpu.memory_space<vmem>>, %arg3: memref<32x32xf32, #tpu.memory_space<vmem>>, %arg4: memref<32x32xf32, #tpu.memory_space<vmem>>, %arg5: memref<32x128xf32, #tpu.memory_space<vmem>>, %arg6: memref<1x128xf32, #tpu.memory_space<vmem>>, %arg7: memref<8x32xf32, #tpu.memory_space<vmem>>, %arg8: memref<32x32xf32, #tpu.memory_space<vmem>>, %arg9: memref<8x128xf32, #tpu.memory_space<vmem>>) attributes {dimension_semantics = [#tpu.dimension_semantics<parallel>], iteration_bounds = array<i64: 1>, scalar_prefetch = 0 : i64, scratch_operands = 0 : i64, tpu.core_type = #tpu.core_type<tc>, window_params = [{transform_indices = @transform_0, window_bounds = array<i64: 8, 32>}, {pipeline_mode = #tpu.pipeline_mode<synchronous>, transform_indices = @transform_1, window_bounds = array<i64: 32, 32>}, {pipeline_mode = #tpu.pipeline_mode<synchronous>, transform_indices = @transform_2, window_bounds = array<i64: 32, 32>}, {pipeline_mode = #tpu.pipeline_mode<synchronous>, transform_indices = @transform_3, window_bounds = array<i64: 32, 32>}, {pipeline_mode = #tpu.pipeline_mode<synchronous>, transform_indices = @transform_4, window_bounds = array<i64: 32, 128>}, {pipeline_mode = #tpu.pipeline_mode<synchronous>, transform_indices = @transform_5, window_bounds = array<i64: 1, 128>}, {pipeline_mode = #tpu.pipeline_mode<synchronous>, transform_indices = @transform_6, window_bounds = array<i64: 8, 32>}, {pipeline_mode = #tpu.pipeline_mode<synchronous>, transform_indices = @transform_7, window_bounds = array<i64: 32, 32>}, {transform_indices = @transform_8, window_bounds = array<i64: 8, 128>}]} {
    %c0 = arith.constant 0 : index
    %c0_0 = arith.constant 0 : index
    %0 = vector.load %arg1[%c0, %c0_0] : memref<8x32xf32, #tpu.memory_space<vmem>>, vector<8x32xf32>
    %c0_1 = arith.constant 0 : index
    %c0_2 = arith.constant 0 : index
    %1 = vector.load %arg2[%c0_1, %c0_2] : memref<32x32xf32, #tpu.memory_space<vmem>>, vector<32x32xf32>
    %cst = arith.constant dense<0.000000e+00> : vector<8x32xf32>
    %2 = tpu.matmul %0, %1, %cst {dimension_numbers = #tpu.dot_dimension_numbers<[1], [0], [0], [1], [0, 0, 1, 1], [], []>} : vector<8x32xf32>, vector<32x32xf32>, vector<8x32xf32> -> vector<8x32xf32>
    %c0_3 = arith.constant 0 : index
    %c0_4 = arith.constant 0 : index
    %3 = vector.load %arg3[%c0_3, %c0_4] : memref<32x32xf32, #tpu.memory_space<vmem>>, vector<32x32xf32>
    %cst_5 = arith.constant dense<0.000000e+00> : vector<8x32xf32>
    %4 = tpu.matmul %0, %3, %cst_5 {dimension_numbers = #tpu.dot_dimension_numbers<[1], [0], [0], [1], [0, 0, 1, 1], [], []>} : vector<8x32xf32>, vector<32x32xf32>, vector<8x32xf32> -> vector<8x32xf32>
    %c0_6 = arith.constant 0 : index
    %c0_7 = arith.constant 0 : index
    %5 = vector.load %arg4[%c0_6, %c0_7] : memref<32x32xf32, #tpu.memory_space<vmem>>, vector<32x32xf32>
    %cst_8 = arith.constant dense<0.000000e+00> : vector<8x32xf32>
    %6 = tpu.matmul %0, %5, %cst_8 {dimension_numbers = #tpu.dot_dimension_numbers<[1], [0], [0], [1], [0, 0, 1, 1], [], []>} : vector<8x32xf32>, vector<32x32xf32>, vector<8x32xf32> -> vector<8x32xf32>
    %c0_9 = arith.constant 0 : index
    %c0_10 = arith.constant 0 : index
    %7 = vector.load %arg7[%c0_9, %c0_10] : memref<8x32xf32, #tpu.memory_space<vmem>>, vector<8x32xf32>
    %c0_11 = arith.constant 0 : index
    %c0_12 = arith.constant 0 : index
    %8 = vector.load %arg8[%c0_11, %c0_12] : memref<32x32xf32, #tpu.memory_space<vmem>>, vector<32x32xf32>
    %9 = vector.shape_cast %4 : vector<8x32xf32> to vector<8x1x32xf32>
    %10 = vector.shape_cast %7 : vector<8x32xf32> to vector<1x8x32xf32>
    %11 = vector.broadcast %9 : vector<8x1x32xf32> to vector<8x8x32xf32>
    %12 = vector.broadcast %10 : vector<1x8x32xf32> to vector<8x8x32xf32>
    %13 = arith.mulf %11, %12 : vector<8x8x32xf32>
    %14 = vector.shape_cast %13 : vector<8x8x32xf32> to vector<64x32xf32>
    %cst_13 = arith.constant dense<0.000000e+00> : vector<64x32xf32>
    %15 = tpu.matmul %14, %8, %cst_13 {dimension_numbers = #tpu.dot_dimension_numbers<[1], [0], [0], [1], [0, 0, 1, 1], [], []>} : vector<64x32xf32>, vector<32x32xf32>, vector<64x32xf32> -> vector<64x32xf32>
    %16 = vector.shape_cast %15 : vector<64x32xf32> to vector<8x8x32xf32>
    %17 = vector.shape_cast %6 : vector<8x32xf32> to vector<8x1x32xf32>
    %18 = vector.shape_cast %7 : vector<8x32xf32> to vector<1x8x32xf32>
    %19 = vector.broadcast %17 : vector<8x1x32xf32> to vector<8x8x32xf32>
    %20 = vector.broadcast %18 : vector<1x8x32xf32> to vector<8x8x32xf32>
    %21 = arith.mulf %19, %20 : vector<8x8x32xf32>
    %22 = vector.shape_cast %21 : vector<8x8x32xf32> to vector<64x32xf32>
    %cst_14 = arith.constant dense<0.000000e+00> : vector<64x32xf32>
    %23 = tpu.matmul %22, %8, %cst_14 {dimension_numbers = #tpu.dot_dimension_numbers<[1], [0], [0], [1], [0, 0, 1, 1], [], []>} : vector<64x32xf32>, vector<32x32xf32>, vector<64x32xf32> -> vector<64x32xf32>
    %24 = vector.shape_cast %23 : vector<64x32xf32> to vector<8x8x32xf32>
    %25 = vector.shape_cast %2 : vector<8x32xf32> to vector<8x1x32xf32>
    %26 = vector.broadcast %25 : vector<8x1x32xf32> to vector<8x8x32xf32>
    %27 = arith.mulf %26, %16 : vector<8x8x32xf32>
    %cst_15 = arith.constant dense<0xFF800000> : vector<8x32xf32>
    %28 = vector.multi_reduction <maximumf>, %27, %cst_15 [1] : vector<8x8x32xf32> to vector<8x32xf32>
    %29 = vector.shape_cast %28 : vector<8x32xf32> to vector<8x1x32xf32>
    %30 = vector.broadcast %29 : vector<8x1x32xf32> to vector<8x8x32xf32>
    %31 = arith.subf %27, %30 : vector<8x8x32xf32>
    %32 = math.exp %31 : vector<8x8x32xf32>
    %cst_16 = arith.constant dense<0.000000e+00> : vector<8x32xf32>
    %33 = vector.multi_reduction <add>, %32, %cst_16 [1] : vector<8x8x32xf32> to vector<8x32xf32>
    %34 = vector.shape_cast %33 : vector<8x32xf32> to vector<8x1x32xf32>
    %35 = tpu.reciprocal %34 {approx = true} : vector<8x1x32xf32> -> vector<8x1x32xf32>
    %36 = vector.broadcast %35 : vector<8x1x32xf32> to vector<8x8x32xf32>
    %37 = arith.mulf %32, %36 : vector<8x8x32xf32>
    %38 = arith.mulf %37, %24 : vector<8x8x32xf32>
    %cst_17 = arith.constant dense<0.000000e+00> : vector<8x32xf32>
    %39 = vector.multi_reduction <add>, %38, %cst_17 [1] : vector<8x8x32xf32> to vector<8x32xf32>
    %c0_18 = arith.constant 0 : index
    %c0_19 = arith.constant 0 : index
    %40 = vector.load %arg5[%c0_18, %c0_19] : memref<32x128xf32, #tpu.memory_space<vmem>>, vector<32x128xf32>
    %cst_20 = arith.constant dense<0.000000e+00> : vector<8x128xf32>
    %41 = tpu.matmul %39, %40, %cst_20 {dimension_numbers = #tpu.dot_dimension_numbers<[1], [0], [0], [1], [0, 0, 1, 1], [], []>} : vector<8x32xf32>, vector<32x128xf32>, vector<8x128xf32> -> vector<8x128xf32>
    %c0_21 = arith.constant 0 : index
    %c0_22 = arith.constant 0 : index
    %42 = vector.load %arg6[%c0_21, %c0_22] : memref<1x128xf32, #tpu.memory_space<vmem>>, vector<1x128xf32>
    %43 = vector.broadcast %42 : vector<1x128xf32> to vector<8x128xf32>
    %44 = arith.addf %41, %43 : vector<8x128xf32>
    %c0_23 = arith.constant 0 : index
    %c0_24 = arith.constant 0 : index
    %45 = vector.load %arg9[%c0_23, %c0_24] : memref<8x128xf32, #tpu.memory_space<vmem>>, vector<8x128xf32>
    tpu.vector_store %arg9[%c0_23, %c0_24], %44 {strides = array<i32>} : memref<8x128xf32, #tpu.memory_space<vmem>>, vector<8x128xf32>,
    return
  }
  func.func @transform_0(%arg0: i32) -> (i32, i32) {
    %c0_i32 = arith.constant 0 : i32
    %c0_i32_0 = arith.constant 0 : i32
    return %arg0, %c0_i32 : i32, i32
  }
  func.func @transform_1(%arg0: i32) -> (i32, i32) {
    %c0_i32 = arith.constant 0 : i32
    %c0_i32_0 = arith.constant 0 : i32
    %c0_i32_1 = arith.constant 0 : i32
    return %c0_i32, %c0_i32_0 : i32, i32
  }
  func.func @transform_2(%arg0: i32) -> (i32, i32) {
    %c0_i32 = arith.constant 0 : i32
    %c0_i32_0 = arith.constant 0 : i32
    %c0_i32_1 = arith.constant 0 : i32
    return %c0_i32, %c0_i32_0 : i32, i32
  }
  func.func @transform_3(%arg0: i32) -> (i32, i32) {
    %c0_i32 = arith.constant 0 : i32
    %c0_i32_0 = arith.constant 0 : i32
    %c0_i32_1 = arith.constant 0 : i32
    return %c0_i32, %c0_i32_0 : i32, i32
  }
  func.func @transform_4(%arg0: i32) -> (i32, i32) {
    %c0_i32 = arith.constant 0 : i32
    %c0_i32_0 = arith.constant 0 : i32
    %c0_i32_1 = arith.constant 0 : i32
    return %c0_i32, %c0_i32_0 : i32, i32
  }
  func.func @transform_5(%arg0: i32) -> (i32, i32) {
    %c0_i32 = arith.constant 0 : i32
    %c0_i32_0 = arith.constant 0 : i32
    %c0_i32_1 = arith.constant 0 : i32
    return %c0_i32, %c0_i32_0 : i32, i32
  }
  func.func @transform_6(%arg0: i32) -> (i32, i32) {
    %c0_i32 = arith.constant 0 : i32
    %c0_i32_0 = arith.constant 0 : i32
    %c0_i32_1 = arith.constant 0 : i32
    return %c0_i32, %c0_i32_0 : i32, i32
  }
  func.func @transform_7(%arg0: i32) -> (i32, i32) {
    %c0_i32 = arith.constant 0 : i32
    %c0_i32_0 = arith.constant 0 : i32
    %c0_i32_1 = arith.constant 0 : i32
    return %c0_i32, %c0_i32_0 : i32, i32
  }
  func.func @transform_8(%arg0: i32) -> (i32, i32) {
    %c0_i32 = arith.constant 0 : i32
    %c0_i32_0 = arith.constant 0 : i32
    return %arg0, %c0_i32 : i32, i32
  }
}

</mosaic_0001>

<bundles_post_ra>
// kernel: tpu_custom_call.1
= control target key start
LH: loop header
LB: loop body
LE: loop exit
PB: predicated region body
PF: predicated region fallthrough
CT: control target
= control target key end

     0   :  { %13 = vsyncpa [#allocation3], 0  ;;  %s1887_s0 = inlined_call_operand.hbm [shape: f32[8,32], index: 0, kind: input, shape index: {}]   ;;  %s1888_s1 = inlined_call_operand.hbm [shape: f32[32,32], index: 1, kind: input, shape index: {}]   ;;  %s1889_s2 = inlined_call_operand.hbm [shape: f32[32,32], index: 2, kind: input, shape index: {}]   ;;  %s1890_s3 = inlined_call_operand.hbm [shape: f32[32,32], index: 3, kind: input, shape index: {}]   ;;  %s1891_s4 = inlined_call_operand.hbm [shape: f32[32,128], index: 4, kind: input, shape index: {}]   ;;  %s1892_s5 = inlined_call_operand.vmem [shape: f32[1,128], index: 5, kind: input, shape index: {}]   ;;  %s1893_s6 = inlined_call_operand.vmem [shape: f32[8,32], index: 6, kind: input, shape index: {}]   ;;  %s1894_s7 = inlined_call_operand.hbm [shape: f32[32,32], index: 7, kind: input, shape index: {}]   ;;  %s1895_s8 = inlined_call_operand.hbm [shape: f32[8,128], index: 8, kind: output, shape index: {}]  }
   0x1   :  { %14 = vsyncpa [#allocation6], 0 }
   0x2   :  { %15 = vsyncpa [#allocation9], 0 }
   0x3   :  { %16 = vsyncpa [#allocation12], 0 }
   0x4   :  { %17 = vsyncpa [#allocation4], 0  ;;  %s1577_s27 = smov [#allocation5]  }
   0x5   :  { %s33_s28 = sshll.u32 %s1577_s27, 4  ;;  %s34_s28 = int_to_ptr.vmem [resolvable:$true] %s33_s28 }
   0x6   :  { %s1435_s29 = scalar_lea.vmem %s34_s28, 512  ;;  %p1440_p1 = scmp.lt.s32.totalorder %s34_s28, %s34_s28 }
   0x7   :  { %p1436_p0 = scmp.ne.s32.totalorder %s34_s28, %s1435_s29  ;;  %p1441_p2 = scmp.lt.s32.totalorder %s1435_s29, %s1435_s29 }
   0x9   :  { %p1442_p3 = por %p1441_p2, %p1440_p1 }
   0xb   :  { %p1443_p4 = pnand %p1442_p3, %p1436_p0 }
   0xd   :  { %1446 = shalt.err (!%p1443_p4)
}
   0xe   :  { %s1578_s30 = smov 128   ;;  %s1579_s9 = smov 8  }
   0xf   :  { %39 = dma.hbm_to_vmem [thread:$0]  %s1888_s1, 512, %s34_s28, [#allocation6], %s1578_s30, %s1578_s30, %s1579_s9  }
  0x10   :  { %s1580_s12 = smov [#allocation8]   ;;  %s1581_s14 = smov [#allocation2]  }
  0x11   :  { %s57_s13 = sshll.u32 %s1580_s12, 4  ;;  %s24_s15 = sshll.u32 %s1581_s14, 4  ;;  %s58_s13 = int_to_ptr.vmem [resolvable:$true] %s57_s13  ;;  %s25_s15 = int_to_ptr.vmem [resolvable:$true] %s24_s15 }
  0x12   :  { %s1455_s16 = scalar_lea.vmem %s58_s13, 512  ;;  %p1460_p6 = scmp.lt.s32.totalorder %s58_s13, %s58_s13 }
  0x13   :  { %p1456_p5 = scmp.ne.s32.totalorder %s58_s13, %s1455_s16  ;;  %p1461_p7 = scmp.lt.s32.totalorder %s1455_s16, %s1455_s16 }
  0x15   :  { %p1462_p8 = por %p1461_p7, %p1460_p6 }
  0x17   :  { %p1463_p9 = pnand %p1462_p8, %p1456_p5 }
  0x19   :  { %1466 = shalt.err (!%p1463_p9)
}
  0x1a   :  { %63 = dma.hbm_to_vmem [thread:$0]  %s1890_s3, 512, %s58_s13, [#allocation9], %s1578_s30, %s1578_s30, %s1579_s9  }
  0x1b   :  { %s1475_s1 = scalar_lea.vmem %s25_s15, 128  ;;  %p1480_p11 = scmp.lt.s32.totalorder %s25_s15, %s25_s15 }
  0x1c   :  { %p1476_p10 = scmp.ne.s32.totalorder %s25_s15, %s1475_s1  ;;  %p1481_p12 = scmp.lt.s32.totalorder %s1475_s1, %s1475_s1 }
  0x1e   :  { %p1482_p13 = por %p1481_p12, %p1480_p11 }
  0x20   :  { %p1483_p0 = pnand %p1482_p13, %p1476_p10 }
  0x22   :  { %1486 = shalt.err (!%p1483_p0)
}
  0x23   :  { %27 = dma.hbm_to_vmem [thread:$0]  %s1887_s0, 128, %s25_s15, [#allocation3]  }
  0x24   :  { %s1582_s21 = smov [#allocation7]   ;;  %s1583_s23 = smov [#allocation10]  }
  0x25   :  { %s45_s22 = sshll.u32 %s1582_s21, 4  ;;  %s69_s24 = sshll.u32 %s1583_s23, 4  ;;  %s46_s22 = int_to_ptr.vmem [resolvable:$true] %s45_s22  ;;  %s70_s24 = int_to_ptr.vmem [resolvable:$true] %s69_s24 }
  0x26   :  { %s1495_s25 = scalar_lea.vmem %s46_s22, 512  ;;  %p1500_p2 = scmp.lt.s32.totalorder %s46_s22, %s46_s22 }
  0x27   :  { %p1496_p1 = scmp.ne.s32.totalorder %s46_s22, %s1495_s25  ;;  %p1501_p3 = scmp.lt.s32.totalorder %s1495_s25, %s1495_s25 }
  0x29   :  { %p1502_p4 = por %p1501_p3, %p1500_p2 }
  0x2b   :  { %p1503_p5 = pnand %p1502_p4, %p1496_p1 }
  0x2d   :  { %1506 = shalt.err (!%p1503_p5)
}
  0x2e   :  { %51 = dma.hbm_to_vmem [thread:$0]  %s1889_s2, 512, %s46_s22, [#allocation6], %s1578_s30, %s1578_s30, %s1579_s9  }
  0x2f   :  { %s1515_s0 = scalar_lea.vmem %s70_s24, 512  ;;  %p1520_p7 = scmp.lt.s32.totalorder %s70_s24, %s70_s24 }
  0x30   :  { %p1516_p6 = scmp.ne.s32.totalorder %s70_s24, %s1515_s0  ;;  %p1521_p8 = scmp.lt.s32.totalorder %s1515_s0, %s1515_s0 }
  0x32   :  { %p1522_p9 = por %p1521_p8, %p1520_p7 }
  0x34   :  { %p1523_p10 = pnand %p1522_p9, %p1516_p6 }
  0x36   :  { %1526 = shalt.err (!%p1523_p10)
}
  0x37   :  { %75 = dma.hbm_to_vmem [thread:$0]  %s1891_s4, 512, %s70_s24, [#allocation9], %s1578_s30, %s1578_s30, %s1579_s9  }
  0x38   :  { %s1584_s29 = smov [#allocation11]  }
  0x39   :  { %s85_s10 = sshll.u32 %s1584_s29, 4  ;;  %s86_s10 = int_to_ptr.vmem [resolvable:$true] %s85_s10 }
  0x3a   :  { %s1535_s11 = scalar_lea.vmem %s86_s10, 512  ;;  %p1540_p12 = scmp.lt.s32.totalorder %s86_s10, %s86_s10 }
  0x3b   :  { %p1536_p11 = scmp.ne.s32.totalorder %s86_s10, %s1535_s11  ;;  %p1541_p13 = scmp.lt.s32.totalorder %s1535_s11, %s1535_s11 }
  0x3d   :  { %p1542_p0 = por %p1541_p13, %p1540_p12 }
  0x3f   :  { %p1543_p1 = pnand %p1542_p0, %p1536_p11 }
  0x41   :  { %1546 = shalt.err (!%p1543_p1)
}
  0x42   :  { %91 = dma.hbm_to_vmem [thread:$0]  %s1894_s7, 512, %s86_s10, [#allocation12], %s1578_s30, %s1578_s30, %s1579_s9  }
  0x43   :  { %1567 = dma.done.wait [#allocation3], 128  }
  0x44   :  { %1568 = vsyncadd [#allocation3], 4294967168 }
  0x45   :  { %1569 = dma.done.wait [#allocation6], 1024  }
  0x46   :  { %1570 = vsyncadd [#allocation6], 4294966272 }
  0x47   :  { %1571 = dma.done.wait [#allocation9], 1024  }
  0x48   :  { %1572 = vsyncadd [#allocation9], 4294966272 }
  0x49   :  { %1573 = dma.done.wait [#allocation12], 512  }
  0x4a   :  { %1574 = vsyncadd [#allocation12], 4294966784  ;;  %v1585_v0 = vmov 0.0   ;;  %vm1586_vm0 = vmmov 0   ;;  %v192_v1 = vld [vmem:[#allocation7 + $0x18] sm:$0xff]  ;;  %v191_v2 = vld [vmem:[#allocation7 + $0x10] sm:$0xff]  ;;  %v347_v20 = vlaneseq }
  0x4b   :  { %1310 = vmatprep.subr.mxu1 %v1585_v0  ;;  %1318 = vmatprep.mubr.msk.f32.mxu1 %vm1586_vm0, %v1585_v0  ;;  %v114_v3 = vld [vmem:[#allocation5 + $0x18] sm:$0xff]  ;;  %v190_v4 = vld [vmem:[#allocation7 + $0x8] sm:$0xff]  ;;  %v113_v5 = vld [vmem:[#allocation5 + $0x10] sm:$0xff]  ;;  %vm115_vm1 = vcmask 261120   ;;  %v1587_v18 = vmov 1966171168  }
  0x4c   :  { %1299 = vmatprep.subr.mxu0 %v1585_v0  ;;  %1307 = vmatprep.mubr.msk.f32.mxu0 %vm1586_vm0, %v1585_v0  ;;  %v112_v6 = vld [vmem:[#allocation5 + $0x8] sm:$0xff]  ;;  %v189_v7 = vld [vmem:[#allocation7] sm:$0xff]  ;;  %v110_v8 = vld [vmem:[#allocation2] sm:$0xff]  ;;  %v345_v19 = vunpack.c.l.s4 %v1587_v18  ;;  %v348_v22 = vshrl.u32 %v347_v20, 7  ;;  %vm1129_vm2 = vcmask 1041409   ;;  %vm1131_vm3 = vcmask 1042434  }
  0x4d   :  { %1311 = vmatpush3.msra.mxu1 %v192_v1  ;;  %1300 = vmatpush3.msra.mxu0 %v114_v3  ;;  %v111_v9 = vld [vmem:[#allocation5] sm:$0xff]  ;;  %v266_v10 = vld [vmem:[#allocation8 + $0x18] sm:$0xff]  ;;  %v265_v11 = vld [vmem:[#allocation8 + $0x10] sm:$0xff]  ;;  %vm1133_vm4 = vcmask 1043459   ;;  %vm1135_vm5 = vcmask 1044484   ;;  %vm1137_vm6 = vcmask 1045509  }
  0x4e   :  { %1312 = vmatprep.subr.mxu1 %v1585_v0  ;;  %1301 = vmatprep.subr.mxu0 %v1585_v0  ;;  %v264_v12 = vld [vmem:[#allocation8 + $0x8] sm:$0xff]  ;;  %v263_v13 = vld [vmem:[#allocation8] sm:$0xff]  ;;  %v341_v14 = vld [vmem:[#allocation11 + $0x18] sm:$0xff]  ;;  %v346_v21 = vunpack.c.0.s8 %v345_v19  ;;  %v1692_v28 = vsub.s32 0, %v348_v22  ;;  %vm1139_vm7 = vcmask 1046534   ;;  %vm1141_vm8 = vcmask 1047559  }
  0x4f   :  { %1313 = vmatpush3.msra.mxu1 %v191_v2  ;;  %1302 = vmatpush3.msra.mxu0 %v113_v5  ;;  %v340_v15 = vld [vmem:[#allocation11 + $0x10] sm:$0xff]  ;;  %v339_v16 = vld [vmem:[#allocation11 + $0x8] sm:$0xff]  ;;  %v338_v17 = vld [vmem:[#allocation11] sm:$0xff]  ;;  %s1588_s9 = smov [#allocation13]  }
  0x50   :  { %1314 = vmatprep.subr.mxu1 %v1585_v0  ;;  %1303 = vmatprep.subr.mxu0 %v1585_v0  ;;  %v1689_v23 = vsub.s32 %v346_v21, %v348_v22  ;;  %v1704_v39 = vld [vmem:[%s1893_s6] sm:$0xff]  ;;  %s1222_s13 = sshll.u32 %s1588_s9, 4  ;;  %s1223_s13 = int_to_ptr.vmem [resolvable:$true] %s1222_s13 }
  0x51   :  { %1315 = vmatpush3.msra.mxu1 %v190_v4  ;;  %1304 = vmatpush3.msra.mxu0 %v112_v6  ;;  %s1547_s14 = scalar_lea.vmem %s1223_s13, 128  ;;  %p1552_p3 = scmp.lt.s32.totalorder %s1223_s13, %s1223_s13 }
  0x52   :  { %1316 = vmatprep.subr.mxu1 %v1585_v0  ;;  %1305 = vmatprep.subr.mxu0 %v1585_v0  ;;  %p1548_p2 = scmp.ne.s32.totalorder %s1223_s13, %s1547_s14  ;;  %p1553_p4 = scmp.lt.s32.totalorder %s1547_s14, %s1547_s14 }
  0x53   :  { %1317 = vmatpush3.msra.mxu1 %v189_v7  ;;  %1306 = vmatpush3.msra.mxu0 %v111_v9 }
  0x54   :  { %1319 = vmatmul.mubr.msk.f32.vlgmr.msra.gmra.mxu1 %vm115_vm1, %v110_v8  ;;  %1321 = vmatprep.subr.mxu0 %v1585_v0  ;;  %p1554_p5 = por %p1553_p4, %p1552_p3 }
  0x55   :  { %1308 = vmatmul.mubr.msk.f32.vlgmr.msra.gmra.mxu0 %vm115_vm1, %v110_v8  ;;  %1332 = vmatprep.subr.mxu1 %v341_v14 }
  0x56   :  { %1322 = vmatpush3.msra.mxu0 %v266_v10  ;;  %1329 = vmatprep.mubr.msk.f32.mxu0 %vm1586_vm0, %v1585_v0  ;;  %p1555_p6 = pnand %p1554_p5, %p1548_p2 }
  0x57   :  { %1323 = vmatprep.subr.mxu0 %v1585_v0  ;;  %1333 = vmatpush3.msra.mxu1 %v341_v14 }
  0x58   :  { %1324 = vmatpush3.msra.mxu0 %v265_v11  ;;  %1334 = vmatprep.subr.mxu1 %v340_v15 }
  0x59   :  { %1325 = vmatprep.subr.mxu0 %v1585_v0  ;;  %1335 = vmatpush3.msra.mxu1 %v340_v15 }
  0x5a   :  { %1326 = vmatpush3.msra.mxu0 %v264_v12  ;;  %1336 = vmatprep.subr.mxu1 %v339_v16 }
  0x5b   :  { %1327 = vmatprep.subr.mxu0 %v1585_v0  ;;  %1337 = vmatpush3.msra.mxu1 %v339_v16 }
  0x5c   :  { %1328 = vmatpush3.msra.mxu0 %v263_v13  ;;  %1338 = vmatprep.subr.mxu1 %v338_v17 }
  0x5d   :  { %1330 = vmatmul.mubr.msk.f32.vlgmr.msra.gmra.mxu0 %vm115_vm1, %v110_v8  ;;  %1352 = vmatprep.subr.mxu0 %v341_v14 }
  0x5e   :  { %1353 = vmatpush3.msra.mxu0 %v341_v14  ;;  %1339 = vmatpush3.msra.mxu1 %v338_v17 }
  0x5f   :  { %1354 = vmatprep.subr.mxu0 %v340_v15  ;;  %1372 = vmatprep.subr.mxu1 %v1585_v0 }
  0x60   :  { %1355 = vmatpush3.msra.mxu0 %v340_v15 }
  0x61   :  { %1356 = vmatprep.subr.mxu0 %v339_v16 }
  0x62   :  { %1357 = vmatpush3.msra.mxu0 %v339_v16 }
  0x63   :  { %1358 = vmatprep.subr.mxu0 %v338_v17 }
  0x64   :  { %1359 = vmatpush3.msra.mxu0 %v338_v17 }
 0x114   :  { %v259_v24 = vpop.f32.mrf.mxu1 }
 0x115   :  { %v343_v25 = vcombine.high %v259_v24, %v259_v24  ;;  %v350_v26 = vrot.slane %v259_v24, %v1689_v23  ;;  %v185_v27 = vpop.f32.mrf.mxu0 }
 0x116   :  { %v1320_v29 = vpop.f32.mrf.mxu1  ;;  %v797_v30 = vcombine.high %v185_v27, %v185_v27  ;;  %v804_v31 = vrot.slane %v185_v27, %v1689_v23 }
 0x117   :  { %v357_v32 = vrot.slane %v343_v25, %v1689_v23  ;;  %v358_v33 = vcombine.high %v350_v26, %v350_v26  ;;  %v366_v34 = vrot.slane %v350_v26, %v1689_v23  ;;  %v1309_v35 = vpop.f32.mrf.mxu0 }
 0x118   :  { %v811_v36 = vrot.slane %v797_v30, %v1689_v23  ;;  %v812_v37 = vcombine.high %v804_v31, %v804_v31  ;;  %v1699_v38 = vrot.slane %v804_v31, %v1689_v23 }
 0x119   :  { %v359_v40 = vcombine.high %v357_v32, %v357_v32  ;;  %v373_v41 = vrot.slane %v357_v32, %v1689_v23  ;;  %v380_v42 = vrot.slane %v358_v33, %v1689_v23  ;;  %v388_v43 = vcombine.high %v366_v34, %v366_v34 }
 0x11a   :  { %v395_v44 = vrot.slane %v366_v34, %v1692_v28  ;;  %v1710_v45 = vrot.slane %v812_v37, %v1689_v23  ;;  %v849_v46 = vrot.slane %v1699_v38, %v1692_v28  ;;  %v813_v57 = vcombine.high %v811_v36, %v811_v36 }
 0x11b   :  { %v387_v47 = vrot.slane %v359_v40, %v1689_v23  ;;  %v389_v48 = vcombine.high %v373_v41, %v373_v41  ;;  %v390_v49 = vcombine.high %v380_v42, %v380_v42  ;;  %v399_v50 = vrot.slane %v380_v42, %v1692_v28 }
 0x11c   :  { %v403_v51 = vrot.slane %v388_v43, %v1692_v28  ;;  %v411_v52 = vrot.slane %v373_v41, %v1692_v28  ;;  %v432_v53 = vmul.f32 %v395_v44, %v1704_v39  ;;  %v853_v54 = vrot.slane %v1710_v45, %v1692_v28 }
 0x11d   :  { %v433_v55 = vmul.f32 %v399_v50, %v1704_v39  ;;  %v407_v56 = vrot.slane %v390_v49, %v1692_v28  ;;  %v333_v58 = vpop.f32.mrf.mxu0  ;;  %v391_v61 = vcombine.high %v387_v47, %v387_v47  ;;  %v415_v63 = vrot.slane %v387_v47, %v1692_v28 }
 0x11e   :  { %1340 = vmatprep.mubr.msk.f32.mxu1 %vm115_vm1, %v432_v53  ;;  %v434_v59 = vmul.f32 %v403_v51, %v1704_v39  ;;  %v570_v60 = vcombine.high %v333_v58, %v333_v58  ;;  %v436_v62 = vmul.f32 %v411_v52, %v1704_v39  ;;  %v577_v1 = vrot.slane %v333_v58, %v1689_v23  ;;  %v1113_v53 = vld [vmem:[#allocation10 + $0x18] sm:$0xff] }
 0x11f   :  { %1341 = vmatmul.mubr.msk.f32.vlgmr.msra.gmra.mxu1 %vm115_vm1, %v433_v55  ;;  %v1331_v2 = vpop.f32.mrf.mxu0  ;;  %v419_v3 = vrot.slane %v389_v48, %v1692_v28  ;;  %v844_v5 = vcombine.high %v1710_v45, %v1710_v45  ;;  %v842_v6 = vcombine.high %v1699_v38, %v1699_v38  ;;  %v435_v7 = vmul.f32 %v407_v56, %v1704_v39  ;;  %v1112_v55 = vld [vmem:[#allocation10 + $0x10] sm:$0xff]  ;;  %v1111_v56 = vld [vmem:[#allocation10 + $0x8] sm:$0xff] }
 0x120   :  { %1343 = vmatprep.mubr.msk.f32.mxu1 %vm115_vm1, %v434_v59  ;;  %v584_v4 = vrot.slane %v570_v60, %v1689_v23  ;;  %v585_v8 = vcombine.high %v577_v1, %v577_v1  ;;  %v593_v9 = vrot.slane %v577_v1, %v1689_v23  ;;  %v1739_v10 = vrot.slane %v813_v57, %v1689_v23  ;;  %v1110_v57 = vld [vmem:[#allocation10] sm:$0xff] }
 0x121   :  { %v1743_v13 = vrot.slane %v844_v5, %v1692_v28  ;;  %v1746_v14 = vrot.slane %v842_v6, %v1692_v28  ;;  %v437_v19 = vmul.f32 %v415_v63, %v1704_v39  ;;  %v423_v20 = vrot.slane %v391_v61, %v1692_v28  ;;  %1373 = vmatpush3.msra.mxu1 %v1113_v53 }
 0x122   :  { %v586_v11 = vcombine.high %v584_v4, %v584_v4  ;;  %v600_v12 = vrot.slane %v584_v4, %v1689_v23  ;;  %v607_v15 = vrot.slane %v585_v8, %v1689_v23  ;;  %v615_v16 = vcombine.high %v593_v9, %v593_v9  ;;  %1374 = vmatprep.subr.mxu1 %v1585_v0 }
 0x123   :  { %1344 = vmatmul.mubr.msk.f32.gmra.mxu1 %vm115_vm1, %v435_v7  ;;  %v622_v17 = vrot.slane %v593_v9, %v1692_v28  ;;  %v869_v18 = vrot.slane %v1739_v10, %v1692_v28  ;;  %v1758_v22 = vrot.slane %v811_v36, %v1689_v23  ;;  %v438_v29 = vmul.f32 %v419_v3, %v1704_v39 }
 0x124   :  { %1346 = vmatprep.mubr.msk.f32.mxu1 %vm115_vm1, %v436_v62  ;;  %v614_v21 = vrot.slane %v586_v11, %v1689_v23  ;;  %v617_v24 = vcombine.high %v607_v15, %v607_v15  ;;  %v626_v25 = vrot.slane %v607_v15, %v1692_v28  ;;  %v630_v26 = vrot.slane %v615_v16, %v1692_v28 }
 0x125   :  { %v659_v27 = vmul.f32 %v622_v17, %v1704_v39  ;;  %v616_v30 = vcombine.high %v600_v12, %v600_v12  ;;  %v638_v31 = vrot.slane %v600_v12, %v1692_v28  ;;  %v439_v34 = vmul.f32 %v423_v20, %v1704_v39  ;;  %1375 = vmatpush3.msra.mxu1 %v1112_v55 }
 0x126   :  { %v660_v32 = vmul.f32 %v626_v25, %v1704_v39  ;;  %v661_v23 = vmul.f32 %v630_v26, %v1704_v39  ;;  %v634_v33 = vrot.slane %v617_v24, %v1692_v28  ;;  %v618_v35 = vcombine.high %v614_v21, %v614_v21  ;;  %1376 = vmatprep.subr.mxu1 %v1585_v0 }
 0x127   :  { %1347 = vmatmul.mubr.msk.f32.gmra.mxu1 %vm115_vm1, %v437_v19  ;;  %1360 = vmatprep.mubr.msk.f32.mxu0 %vm115_vm1, %v659_v27  ;;  %v865_v36 = vrot.slane %v1758_v22, %v1692_v28  ;;  %v642_v40 = vrot.slane %v614_v21, %v1692_v28  ;;  %v845_v41 = vcombine.high %v1739_v10, %v1739_v10 }
 0x128   :  { %1349 = vmatprep.mubr.msk.f32.mxu1 %vm115_vm1, %v438_v29  ;;  %1361 = vmatmul.mubr.msk.f32.vlgmr.msra.gmra.mxu0 %vm115_vm1, %v660_v32  ;;  %v662_v37 = vmul.f32 %v634_v33, %v1704_v39  ;;  %v843_v42 = vcombine.high %v1758_v22, %v1758_v22  ;;  %v663_v43 = vmul.f32 %v638_v31, %v1704_v39 }
 0x129   :  { %1363 = vmatprep.mubr.msk.f32.mxu0 %vm115_vm1, %v661_v23  ;;  %v646_v44 = vrot.slane %v616_v30, %v1692_v28  ;;  %v877_v47 = vrot.slane %v845_v41, %v1692_v28  ;;  %v664_v49 = vmul.f32 %v642_v40, %v1704_v39  ;;  %v650_v50 = vrot.slane %v618_v35, %v1692_v28 }
 0x12a   :  { %v1787_v48 = vrot.slane %v843_v42, %v1692_v28  ;;  %1377 = vmatpush3.msra.mxu1 %v1111_v56 }
 0x12b   :  { %1350 = vmatmul.mubr.msk.f32.gmra.mxu1 %vm115_vm1, %v439_v34  ;;  %v665_v51 = vmul.f32 %v646_v44, %v1704_v39  ;;  %v666_v52 = vmul.f32 %v650_v50, %v1704_v39  ;;  %1378 = vmatprep.subr.mxu1 %v1585_v0 }
 0x12c   :  { %1380 = vmatprep.mubr.msk.f32.mxu1 %vm1586_vm0, %v1585_v0  ;;  %1364 = vmatmul.mubr.msk.f32.gmra.mxu0 %vm115_vm1, %v662_v37 }
 0x12d   :  { %1366 = vmatprep.mubr.msk.f32.mxu0 %vm115_vm1, %v663_v43  ;;  %1379 = vmatpush3.msra.mxu1 %v1110_v57 }
 0x130   :  { %1367 = vmatmul.mubr.msk.f32.gmra.mxu0 %vm115_vm1, %v664_v49 }
 0x131   :  { %1369 = vmatprep.mubr.msk.f32.mxu0 %vm115_vm1, %v665_v51 }
 0x134   :  { %1370 = vmatmul.mubr.msk.f32.gmra.mxu0 %vm115_vm1, %v666_v52 }
 0x1df   :  { %v1342_v58 = vpop.f32.mrf.mxu1 }
 0x1e0   :  { %v887_v39 = vmul.f32 %v1342_v58, %v853_v54 }
 0x1e1   :  { %v530_v59 = vpop.f32.mrf.mxu1 }
 0x1e2   :  { %v901_v60 = vsel %vm115_vm1, %v887_v39, -inf  ;;  %v886_v61 = vmul.f32 %v849_v46, %v530_v59 }
 0x1e3   :  { %v902_v62 = vrot.slane %v901_v60, 4  ;;  %v1345_v63 = vpop.f32.mrf.mxu1 }
 0x1e4   :  { %v894_v1 = vsel %vm115_vm1, %v886_v61, -inf  ;;  %v889_v2 = vmul.f32 %v1345_v63, %v1743_v13 }
 0x1e5   :  { %v903_v0 = vmax.f32 %v901_v60, %v902_v62  ;;  %v895_v3 = vrot.slane %v894_v1, 4  ;;  %v540_v4 = vpop.f32.mrf.mxu1 }
 0x1e6   :  { %v915_v5 = vsel %vm115_vm1, %v889_v2, -inf  ;;  %v1814_v45 = vmul.f32 %v1746_v14, %v540_v4 }
 0x1e7   :  { %v904_v54 = vrot.slane %v903_v0, 2  ;;  %v896_v6 = vmax.f32 %v894_v1, %v895_v3  ;;  %v916_v7 = vrot.slane %v915_v5, 4  ;;  %v1348_v8 = vpop.f32.mrf.mxu1 }
 0x1e8   :  { %v908_v38 = vsel %vm115_vm1, %v1814_v45, -inf  ;;  %v1821_v46 = vmul.f32 %v1348_v8, %v869_v18 }
 0x1e9   :  { %v905_v9 = vmax.f32 %v903_v0, %v904_v54  ;;  %v897_v11 = vrot.slane %v896_v6, 2  ;;  %v917_v12 = vmax.f32 %v915_v5, %v916_v7  ;;  %v909_v13 = vrot.slane %v908_v38, 4  ;;  %v550_v15 = vpop.f32.mrf.mxu1 }
 0x1ea   :  { %v929_v14 = vsel %vm115_vm1, %v1821_v46, -inf  ;;  %v890_v16 = vmul.f32 %v865_v36, %v550_v15 }
 0x1eb   :  { %v906_v17 = vrot.slane %v905_v9, 1  ;;  %v898_v19 = vmax.f32 %v896_v6, %v897_v11  ;;  %v918_v20 = vrot.slane %v917_v12, 2  ;;  %v910_v21 = vmax.f32 %v908_v38, %v909_v13  ;;  %v1351_v22 = vpop.f32.mrf.mxu1 }
 0x1ec   :  { %v930_v24 = vrot.slane %v929_v14, 4  ;;  %v922_v25 = vsel %vm115_vm1, %v890_v16, -inf  ;;  %v893_v28 = vmul.f32 %v1351_v22, %v877_v47 }
 0x1ed   :  { %v907_v10 = vmax.f32 %v905_v9, %v906_v17  ;;  %v899_v18 = vrot.slane %v898_v19, 1  ;;  %v919_v26 = vmax.f32 %v917_v12, %v918_v20  ;;  %v911_v27 = vrot.slane %v910_v21, 2  ;;  %v560_v29 = vpop.f32.mrf.mxu1 }
 0x1ee   :  { %v931_v30 = vmax.f32 %v929_v14, %v930_v24  ;;  %v923_v31 = vrot.slane %v922_v25, 4  ;;  %v943_v32 = vsel %vm115_vm1, %v893_v28, -inf  ;;  %v892_v23 = vmul.f32 %v1787_v48, %v560_v29 }
 0x1ef   :  { %v951_v33 = vsub.f32 %v887_v39, %v907_v10  ;;  %v900_v34 = vmax.f32 %v898_v19, %v899_v18  ;;  %v920_v35 = vrot.slane %v919_v26, 1  ;;  %v912_v36 = vmax.f32 %v910_v21, %v911_v27 }
 0x1f0   :  { %v932_v37 = vrot.slane %v931_v30, 2  ;;  %v924_v40 = vmax.f32 %v922_v25, %v923_v31  ;;  %v944_v41 = vrot.slane %v943_v32, 4  ;;  %v936_v42 = vsel %vm115_vm1, %v892_v23, -inf }
 0x1f1   :  { %v960_v43 = vmul.f32 1.442695, %v951_v33  ;;  %v950_v44 = vsub.f32 %v886_v61, %v900_v34  ;;  %v921_v47 = vmax.f32 %v919_v26, %v920_v35  ;;  %v913_v49 = vrot.slane %v912_v36, 1 }
 0x1f2   :  { %v933_v50 = vmax.f32 %v931_v30, %v932_v37  ;;  %v925_v51 = vrot.slane %v924_v40, 2  ;;  %v945_v52 = vmax.f32 %v943_v32, %v944_v41  ;;  %v937_v53 = vrot.slane %v936_v42, 4 }
 0x1f3   :  { %1395 = vpow2.f32 %v960_v43  ;;  %v958_v55 = vmul.f32 1.442695, %v950_v44  ;;  %v953_v48 = vsub.f32 %v889_v2, %v921_v47  ;;  %v914_v56 = vmax.f32 %v912_v36, %v913_v49 }
 0x1f4   :  { %v934_v57 = vrot.slane %v933_v50, 1  ;;  %v926_v58 = vmax.f32 %v924_v40, %v925_v51  ;;  %v946_v39 = vrot.slane %v945_v52, 2  ;;  %v938_v59 = vmax.f32 %v936_v42, %v937_v53 }
 0x1f5   :  { %1397 = vpow2.f32 %v958_v55  ;;  %v964_v60 = vmul.f32 1.442695, %v953_v48  ;;  %v952_v62 = vsub.f32 %v1814_v45, %v914_v56 }
 0x1f6   :  { %v935_v63 = vmax.f32 %v933_v50, %v934_v57  ;;  %v927_v61 = vrot.slane %v926_v58, 1  ;;  %v947_v1 = vmax.f32 %v945_v52, %v946_v39  ;;  %v939_v0 = vrot.slane %v938_v59, 2 }
 0x1f7   :  { %1399 = vpow2.f32 %v964_v60  ;;  %v962_v3 = vmul.f32 1.442695, %v952_v62 }
 0x1f8   :  { %v955_v4 = vsub.f32 %v1821_v46, %v935_v63  ;;  %v928_v5 = vmax.f32 %v926_v58, %v927_v61  ;;  %v948_v54 = vrot.slane %v947_v1, 1  ;;  %v940_v2 = vmax.f32 %v938_v59, %v939_v0  ;;  %v1362_v0 = vpop.f32.mrf.mxu0 }
 0x1f9   :  { %1401 = vpow2.f32 %v962_v3 }
 0x1fa   :  { %v968_v6 = vmul.f32 1.442695, %v955_v4  ;;  %v954_v7 = vsub.f32 %v890_v16, %v928_v5  ;;  %v949_v8 = vmax.f32 %v947_v1, %v948_v54  ;;  %v941_v38 = vrot.slane %v940_v2, 1 }
 0x1fc   :  { %1403 = vpow2.f32 %v968_v6  ;;  %v966_v9 = vmul.f32 1.442695, %v954_v7  ;;  %v957_v11 = vsub.f32 %v893_v28, %v949_v8  ;;  %v942_v45 = vmax.f32 %v940_v2, %v941_v38  ;;  %v757_v8 = vpop.f32.mrf.mxu0 }
 0x1fe   :  { %1405 = vpow2.f32 %v966_v9  ;;  %v972_v12 = vmul.f32 1.442695, %v957_v11  ;;  %v956_v13 = vsub.f32 %v892_v23, %v942_v45 }
 0x200   :  { %v1831_v15 = vpop.eup %1395  ;;  %1407 = vpow2.f32 %v972_v12  ;;  %v970_v14 = vmul.f32 1.442695, %v956_v13 }
 0x201   :  { %v981_v46 = vsel %vm115_vm1, %v1831_v15, 0.0 }
 0x202   :  { %v1835_v17 = vpop.eup %1397  ;;  %v982_v19 = vrot.slane %v981_v46, 4  ;;  %1409 = vpow2.f32 %v970_v14  ;;  %v1365_v14 = vpop.f32.mrf.mxu0 }
 0x203   :  { %v974_v16 = vsel %vm115_vm1, %v1835_v17, 0.0 }
 0x204   :  { %v1839_v20 = vpop.eup %1399  ;;  %v983_v21 = vadd.f32 %v982_v19, %v981_v46  ;;  %v975_v22 = vrot.slane %v974_v16, 4 }
 0x205   :  { %v995_v24 = vsel %vm115_vm1, %v1839_v20, 0.0 }
 0x206   :  { %v1843_v25 = vpop.eup %1401  ;;  %v984_v28 = vrot.slane %v983_v21, 2  ;;  %v976_v10 = vadd.f32 %v975_v22, %v974_v16  ;;  %v996_v18 = vrot.slane %v995_v24, 4 }
 0x207   :  { %v988_v26 = vsel %vm115_vm1, %v1843_v25, 0.0 }
 0x208   :  { %v977_v27 = vrot.slane %v976_v10, 2  ;;  %v997_v29 = vadd.f32 %v996_v18, %v995_v24  ;;  %v989_v30 = vrot.slane %v988_v26, 4  ;;  %v985_v31 = vadd.f32 %v984_v28, %v983_v21  ;;  %v767_v24 = vpop.f32.mrf.mxu0 }
 0x209   :  { %v1847_v32 = vpop.eup %1403 }
 0x20a   :  { %v998_v23 = vrot.slane %v997_v29, 2  ;;  %v990_v33 = vadd.f32 %v989_v30, %v988_v26  ;;  %v1009_v34 = vsel %vm115_vm1, %v1847_v32, 0.0  ;;  %v986_v35 = vrot.slane %v985_v31, 1 }
 0x20b   :  { %v1851_v36 = vpop.eup %1405  ;;  %v1010_v37 = vrot.slane %v1009_v34, 4  ;;  %v978_v40 = vadd.f32 %v977_v27, %v976_v10 }
 0x20c   :  { %v991_v41 = vrot.slane %v990_v33, 2  ;;  %v1002_v42 = vsel %vm115_vm1, %v1851_v36, 0.0  ;;  %v987_v43 = vadd.f32 %v986_v35, %v985_v31  ;;  %v999_v44 = vadd.f32 %v998_v23, %v997_v29 }
 0x20d   :  { %v1855_v47 = vpop.eup %1407  ;;  %v1011_v49 = vadd.f32 %v1010_v37, %v1009_v34  ;;  %v1003_v50 = vrot.slane %v1002_v42, 4  ;;  %v979_v51 = vrot.slane %v978_v40, 1 }
 0x20e   :  { %v1023_v52 = vsel %vm115_vm1, %v1855_v47, 0.0  ;;  %1411 = vrcp.f32 %v987_v43  ;;  %v1000_v53 = vrot.slane %v999_v44, 1  ;;  %v992_v55 = vadd.f32 %v991_v41, %v990_v33  ;;  %v1368_v33 = vpop.f32.mrf.mxu0 }
 0x20f   :  { %v1859_v48 = vpop.eup %1409  ;;  %v1012_v56 = vrot.slane %v1011_v49, 2  ;;  %v1004_v57 = vadd.f32 %v1003_v50, %v1002_v42  ;;  %v1024_v58 = vrot.slane %v1023_v52, 4  ;;  %v980_v39 = vadd.f32 %v979_v51, %v978_v40 }
 0x210   :  { %v1016_v59 = vsel %vm115_vm1, %v1859_v48, 0.0  ;;  %v1001_v60 = vadd.f32 %v1000_v53, %v999_v44  ;;  %v993_v62 = vrot.slane %v992_v55, 1 }
 0x211   :  { %v1005_v63 = vrot.slane %v1004_v57, 2  ;;  %v1025_v61 = vadd.f32 %v1024_v58, %v1023_v52  ;;  %v1017_v1 = vrot.slane %v1016_v59, 4  ;;  %1413 = vrcp.f32 %v980_v39 }
 0x212   :  { %1415 = vrcp.f32 %v1001_v60  ;;  %v994_v3 = vadd.f32 %v993_v62, %v992_v55  ;;  %v1013_v4 = vadd.f32 %v1012_v56, %v1011_v49  ;;  %v777_v49 = vpop.f32.mrf.mxu0 }
 0x213   :  { %v1026_v5 = vrot.slane %v1025_v61, 2  ;;  %v1018_v54 = vadd.f32 %v1017_v1, %v1016_v59  ;;  %v1006_v2 = vadd.f32 %v1005_v63, %v1004_v57 }
 0x214   :  { %1417 = vrcp.f32 %v994_v3  ;;  %v1014_v6 = vrot.slane %v1013_v4, 1 }
 0x215   :  { %v1019_v7 = vrot.slane %v1018_v54, 2  ;;  %v1007_v38 = vrot.slane %v1006_v2, 1  ;;  %v1027_v9 = vadd.f32 %v1026_v5, %v1025_v61  ;;  %v1371_v61 = vpop.f32.mrf.mxu0 }
 0x216   :  { %v1015_v11 = vadd.f32 %v1014_v6, %v1013_v4 }
 0x217   :  { %v1008_v45 = vadd.f32 %v1007_v38, %v1006_v2  ;;  %v1028_v12 = vrot.slane %v1027_v9, 1  ;;  %v1020_v13 = vadd.f32 %v1019_v7, %v1018_v54 }
 0x218   :  { %1419 = vrcp.f32 %v1015_v11 }
 0x219   :  { %1421 = vrcp.f32 %v1008_v45  ;;  %v1029_v46 = vadd.f32 %v1028_v12, %v1027_v9  ;;  %v1021_v19 = vrot.slane %v1020_v13, 1  ;;  %v787_v45 = vpop.f32.mrf.mxu0 }
 0x21b   :  { %v1412_v16 = vpop.eup %1411  ;;  %1423 = vrcp.f32 %v1029_v46  ;;  %v1022_v21 = vadd.f32 %v1021_v19, %v1020_v13 }
 0x21c   :  { %v1039_v22 = vmul.f32 %v1412_v16, %v1831_v15 }
 0x21d   :  { %1425 = vrcp.f32 %v1022_v21 }
 0x21e   :  { %v1414_v28 = vpop.eup %1413  ;;  %v1047_v10 = vmul.f32 %v1362_v0, %v1039_v22 }
 0x21f   :  { %v1416_v18 = vpop.eup %1415  ;;  %v1038_v26 = vmul.f32 %v1414_v28, %v1835_v17 }
 0x220   :  { %v1061_v27 = vsel %vm115_vm1, %v1047_v10, 0.0  ;;  %v1041_v29 = vmul.f32 %v1416_v18, %v1839_v20 }
 0x221   :  { %v1418_v30 = vpop.eup %1417  ;;  %v1062_v31 = vrot.slane %v1061_v27, 4  ;;  %v1046_v23 = vmul.f32 %v1038_v26, %v757_v8 }
 0x222   :  { %v1049_v34 = vmul.f32 %v1365_v14, %v1041_v29  ;;  %v1040_v35 = vmul.f32 %v1418_v30, %v1843_v25 }
 0x223   :  { %v1063_v37 = vadd.f32 %v1062_v31, %v1061_v27  ;;  %v1054_v15 = vsel %vm115_vm1, %v1046_v23, 0.0 }
 0x224   :  { %v1055_v40 = vrot.slane %v1054_v15, 4  ;;  %v1075_v41 = vsel %vm115_vm1, %v1049_v34, 0.0  ;;  %v1048_v42 = vmul.f32 %v1040_v35, %v767_v24 }
 0x225   :  { %v1420_v43 = vpop.eup %1419  ;;  %v1064_v17 = vrot.slane %v1063_v37, 2  ;;  %v1076_v44 = vrot.slane %v1075_v41, 4 }
 0x226   :  { %v1422_v50 = vpop.eup %1421  ;;  %v1056_v20 = vadd.f32 %v1055_v40, %v1054_v15  ;;  %v1068_v51 = vsel %vm115_vm1, %v1048_v42, 0.0  ;;  %v1043_v52 = vmul.f32 %v1420_v43, %v1847_v32 }
 0x227   :  { %v1065_v53 = vadd.f32 %v1064_v17, %v1063_v37  ;;  %v1077_v55 = vadd.f32 %v1076_v44, %v1075_v41  ;;  %v1069_v25 = vrot.slane %v1068_v51, 4  ;;  %v1042_v56 = vmul.f32 %v1422_v50, %v1851_v36 }
 0x228   :  { %v1424_v57 = vpop.eup %1423  ;;  %v1057_v58 = vrot.slane %v1056_v20, 2  ;;  %v1051_v39 = vmul.f32 %v1368_v33, %v1043_v52 }
 0x229   :  { %v1066_v59 = vrot.slane %v1065_v53, 1  ;;  %v1078_v60 = vrot.slane %v1077_v55, 2  ;;  %v1070_v62 = vadd.f32 %v1069_v25, %v1068_v51  ;;  %v1050_v63 = vmul.f32 %v1042_v56, %v777_v49 }
 0x22a   :  { %v1426_v1 = vpop.eup %1425  ;;  %v1058_v0 = vadd.f32 %v1057_v58, %v1056_v20  ;;  %v1089_v3 = vsel %vm115_vm1, %v1051_v39, 0.0  ;;  %v1045_v4 = vmul.f32 %v1424_v57, %v1855_v47 }
 0x22b   :  { %v1079_v32 = vadd.f32 %v1078_v60, %v1077_v55  ;;  %v1071_v5 = vrot.slane %v1070_v62, 2  ;;  %v1090_v54 = vrot.slane %v1089_v3, 4  ;;  %v1082_v36 = vsel %vm115_vm1, %v1050_v63, 0.0 }
 0x22c   :  { %v1059_v2 = vrot.slane %v1058_v0, 1  ;;  %v1053_v6 = vmul.f32 %v1371_v61, %v1045_v4  ;;  %v1044_v7 = vmul.f32 %v1426_v1, %v1859_v48  ;;  %v1067_v8 = vadd.f32 %v1066_v59, %v1065_v53  ;;  %v1253_v53 = vld [vmem:[%s1892_s5] ss:$0 sm:$0xff] }
 0x22d   :  { %v1072_v38 = vadd.f32 %v1071_v5, %v1070_v62  ;;  %v1091_v9 = vadd.f32 %v1090_v54, %v1089_v3  ;;  %v1083_v11 = vrot.slane %v1082_v36, 4  ;;  %v1080_v13 = vrot.slane %v1079_v32, 1 }
 0x22e   :  { %v1060_v12 = vadd.f32 %v1059_v2, %v1058_v0  ;;  %v1103_v14 = vsel %vm115_vm1, %v1053_v6, 0.0  ;;  %v1052_v47 = vmul.f32 %v1044_v7, %v787_v45 }
 0x22f   :  { %v1073_v46 = vrot.slane %v1072_v38, 1  ;;  %v1092_v19 = vrot.slane %v1091_v9, 2  ;;  %v1084_v16 = vadd.f32 %v1083_v11, %v1082_v36  ;;  %v1104_v22 = vrot.slane %v1103_v14, 4 }
 0x230   :  { %v1130_v21 = vsel %vm1129_vm2, %v1067_v8, %v1060_v12  ;;  %v1096_v48 = vsel %vm115_vm1, %v1052_v47, 0.0  ;;  %v1081_v26 = vadd.f32 %v1080_v13, %v1079_v32 }
 0x231   :  { %v1074_v24 = vadd.f32 %v1073_v46, %v1072_v38  ;;  %v1093_v28 = vadd.f32 %v1092_v19, %v1091_v9  ;;  %v1085_v10 = vrot.slane %v1084_v16, 2  ;;  %v1097_v18 = vrot.slane %v1096_v48, 4 }
 0x232   :  { %v1105_v27 = vadd.f32 %v1104_v22, %v1103_v14 }
 0x233   :  { %v1132_v29 = vsel %vm1131_vm3, %v1074_v24, %v1130_v21  ;;  %v1086_v30 = vadd.f32 %v1085_v10, %v1084_v16  ;;  %v1098_v31 = vadd.f32 %v1097_v18, %v1096_v48  ;;  %v1094_v23 = vrot.slane %v1093_v28, 1 }
 0x234   :  { %v1134_v33 = vsel %vm1133_vm4, %v1081_v26, %v1132_v29  ;;  %v1106_v34 = vrot.slane %v1105_v27, 2 }
 0x235   :  { %v1087_v35 = vrot.slane %v1086_v30, 1  ;;  %v1099_v37 = vrot.slane %v1098_v31, 2  ;;  %v1095_v42 = vadd.f32 %v1094_v23, %v1093_v28 }
 0x236   :  { %v1107_v15 = vadd.f32 %v1106_v34, %v1105_v27 }
 0x237   :  { %v1088_v40 = vadd.f32 %v1087_v35, %v1086_v30  ;;  %v1100_v41 = vadd.f32 %v1099_v37, %v1098_v31 }
 0x238   :  { %v1108_v43 = vrot.slane %v1107_v15, 1 }
 0x239   :  { %v1136_v17 = vsel %vm1135_vm5, %v1088_v40, %v1134_v33  ;;  %v1101_v44 = vrot.slane %v1100_v41, 1 }
 0x23a   :  { %v1138_v49 = vsel %vm1137_vm6, %v1095_v42, %v1136_v17  ;;  %v1109_v20 = vadd.f32 %v1108_v43, %v1107_v15 }
 0x23b   :  { %v1102_v50 = vadd.f32 %v1101_v44, %v1100_v41 }
 0x23d   :  { %v1140_v51 = vsel %vm1139_vm7, %v1102_v50, %v1138_v49 }
 0x23e   :  { %v1142_v52 = vsel %vm1141_vm8, %v1109_v20, %v1140_v51 }
 0x23f   :  { %1381 = vmatmul.mubr.msk.f32.vlgmr.msra.gmra.mxu1 %vm115_vm1, %v1142_v52 }
 0x2ff   :  { %v1211_v55 = vpop.f32.mrf.mxu1 }
 0x300   :  { %v1212_v25 = vadd.f32 %v1253_v53, %v1211_v55 }
 0x301   :  { %v1382_v56 = vpop.f32.mrf.mxu1 }
 0x302   :  { %1215 = vst [vmem:[#allocation13] sm:$0xff] %v1212_v25 }
 0x303   :  { %1558 = shalt.err (!%p1555_p6)
}
 0x304   :  { %1225 = dma.vmem_to_hbm [thread:$0]  %s1223_s13, 128, %s1895_s8, [#allocation4]  }
 0x305   :  { %1575 = dma.done.wait [#allocation4], 128  }
 0x306   :  { %1576 = vsyncadd [#allocation4], 4294967168 }
 0x307   :  { %1229 = vsyncpa [#allocation3], 1 }
 0x308   :  { %1230 = vsyncpa [#allocation6], 1 }
 0x309   :  { %1231 = vsyncpa [#allocation9], 1 }
 0x30a   :  { %1232 = vsyncpa [#allocation12], 1 }
 0x30b   :  { %1233 = vsyncpa [#allocation4], 1 }

</bundles_post_ra>
